<compile_context>
chip_gen: v5e
topology: v5e:2x2
jax: 0.10.0
libtpu: 0.0.40
codegen_flags: <defaults>
</compile_context>

<pallas_src>
import math
from functools import partial

import jax
import jax.numpy as jnp
from jax.experimental import pallas as pl
from jax.experimental.pallas import tpu as pltpu


def _round_up(x: int, m: int) -> int:
    return (x + m - 1) // m * m


def _embedding_gather_kernel(ids_ref, emb_hbm, out_ref, row_buf, copy_sems,
                             *, scale, tokens_per_tile):
    """Gather `tokens_per_tile` embedding rows from HBM, scale, store.

    ids_ref   : SMEM (N_pad,) int32      -- scalar-prefetch arg (all token ids)
    emb_hbm   : ANY  (V, D)  f32         -- embedding table, stays in HBM
    out_ref   : VMEM (T, D)  f32         -- output tile
    row_buf   : VMEM (T, D)  f32         -- DMA landing buffer (scratch)
    copy_sems : DMA semaphores, shape (T,)
    """
    tile = pl.program_id(0)
    base = tile * tokens_per_tile

    # Issue every row-gather DMA up front so they all overlap.
    for t in range(tokens_per_tile):
        row = ids_ref[base + t]
        pltpu.make_async_copy(emb_hbm.at[row], row_buf.at[t],
                              copy_sems.at[t]).start()

    # Wait for them all.  (The src index is irrelevant for the wait -- only
    # the copy shape matters -- same idiom as the paged-attention kernel.)
    for t in range(tokens_per_tile):
        pltpu.make_async_copy(emb_hbm.at[0], row_buf.at[t],
                              copy_sems.at[t]).wait()

    # Fused sqrt(d_model) scaling; rides in spare VPU slots under the stores.
    out_ref[...] = row_buf[...] * scale


def input_embedding(token_ids, emb_table, d_model, *, tokens_per_tile=256):
    """token_ids: (B, S) int; emb_table: (V, D) f32 -> (B, S, D) f32."""
    B, S = token_ids.shape
    V, D = emb_table.shape
    assert D == d_model
    N = B * S

    # Token tile per grid step: large to amortize per-step overhead, but no
    # larger than the (sublane-rounded) token count for small inputs.
    T = min(tokens_per_tile, _round_up(N, 8))
    N_pad = _round_up(N, T)

    ids_flat = token_ids.reshape(N).astype(jnp.int32)
    # Clamp so a bad token id can never become an unchecked OOB HBM read
    # (PyTorch's nn.Embedding would raise instead).
    ids_flat = jnp.clip(ids_flat, 0, V - 1)
    if N_pad != N:
        ids_flat = jnp.pad(ids_flat, (0, N_pad - N))  # pad with row 0

    scale = float(math.sqrt(d_model))
    kernel = partial(_embedding_gather_kernel, scale=scale, tokens_per_tile=T)

    out_flat = pl.pallas_call(
        kernel,
        out_shape=jax.ShapeDtypeStruct((N_pad, D), emb_table.dtype),
        grid_spec=pltpu.PrefetchScalarGridSpec(
            num_scalar_prefetch=1,                    # ids -> SMEM
            grid=(N_pad // T,),
            in_specs=[
                pl.BlockSpec(memory_space=pl.ANY),    # table stays in HBM
            ],
            out_specs=pl.BlockSpec((T, D), lambda i, ids: (i, 0)),
            scratch_shapes=[
                pltpu.VMEM((T, D), emb_table.dtype),  # DMA landing buffer
                pltpu.SemaphoreType.DMA((T,)),        # one sem per row copy
            ],
        ),
        compiler_params=pltpu.CompilerParams(
            dimension_semantics=("arbitrary",)),
    )(ids_flat, emb_table)

    return out_flat[:N].reshape(B, S, D)


if __name__ == "__main__":
    d_model = 32
    vocab_size = 128
    B, S = 2, 8

    key = jax.random.PRNGKey(0)
    k_emb, k_ids = jax.random.split(key)

    # nn.Embedding default init: N(0, 1)
    emb_table = jax.random.normal(k_emb, (vocab_size, d_model),
                                  dtype=jnp.float32)
    token_ids = jax.random.randint(k_ids, (B, S), 0, vocab_size,
                                   dtype=jnp.int32)

    out = input_embedding(token_ids, emb_table, d_model)
    out = jax.block_until_ready(out)

    # sanity check against plain-JAX reference
    ref = emb_table[token_ids] * math.sqrt(d_model)
    assert out.shape == (B, S, d_model)
    assert jnp.allclose(out, ref, atol=1e-5, rtol=1e-5)

    print("KERNEL_OK")
</pallas_src>

<mosaic_0001>
module attributes {stable_mosaic.version = 11 : i64} {
  func.func @_embedding_gather_kernel(%arg0: i32, %arg1: memref<16xi32, #tpu.memory_space<smem>>, %arg2: memref<128x32xf32, #tpu.memory_space<any>>, %arg3: memref<16x32xf32, #tpu.memory_space<vmem>>, %arg4: memref<16x32xf32, #tpu.memory_space<vmem>>, %arg5: memref<16x!tpu.dma_semaphore, #tpu.memory_space<semaphore_mem>>) attributes {dimension_semantics = [#tpu.dimension_semantics<arbitrary>], iteration_bounds = array<i64: 1>, scalar_prefetch = 1 : i64, scratch_operands = 2 : i64, tpu.core_type = #tpu.core_type<tc>, window_params = [{}, {transform_indices = @transform_1, window_bounds = array<i64: 16, 32>}]} {
    %c16_i32 = arith.constant 16 : i32
    %0 = arith.muli %arg0, %c16_i32 : i32
    %c0_i32 = arith.constant 0 : i32
    %1 = arith.addi %0, %c0_i32 : i32
    %2 = arith.index_cast %1 : i32 to index
    %3 = memref.load %arg1[%2] : memref<16xi32, #tpu.memory_space<smem>>
    %c0_i32_0 = arith.constant 0 : i32
    %c0_i32_1 = arith.constant 0 : i32
    %c0_i32_2 = arith.constant 0 : i32
    %4 = tpu.memref_slice %arg2[%3, %c0_i32_2] : memref<128x32xf32, #tpu.memory_space<any>> -> memref<1x32xf32, #tpu.memory_space<any>>
    %5 = tpu.memref_squeeze %4 : memref<1x32xf32, #tpu.memory_space<any>> -> memref<32xf32, #tpu.memory_space<any>>
    %c0_i32_3 = arith.constant 0 : i32
    %6 = tpu.memref_slice %arg4[%c0_i32_0, %c0_i32_3] : memref<16x32xf32, #tpu.memory_space<vmem>> -> memref<1x32xf32, #tpu.memory_space<vmem>>
    %7 = tpu.memref_squeeze %6 : memref<1x32xf32, #tpu.memory_space<vmem>> -> memref<32xf32, #tpu.memory_space<vmem>>
    %8 = tpu.memref_slice %arg5[%c0_i32_1] : memref<16x!tpu.dma_semaphore, #tpu.memory_space<semaphore_mem>> -> memref<1x!tpu.dma_semaphore, #tpu.memory_space<semaphore_mem>>
    %9 = tpu.memref_squeeze %8 : memref<1x!tpu.dma_semaphore, #tpu.memory_space<semaphore_mem>> -> memref<!tpu.dma_semaphore, #tpu.memory_space<semaphore_mem>>
    tpu.enqueue_dma source(%5 : memref<32xf32, #tpu.memory_space<any>>) target(%7 : memref<32xf32, #tpu.memory_space<vmem>>) target_semaphore(%9 : memref<!tpu.dma_semaphore, #tpu.memory_space<semaphore_mem>>)
    %c1_i32 = arith.constant 1 : i32
    %10 = arith.addi %0, %c1_i32 : i32
    %11 = arith.index_cast %10 : i32 to index
    %12 = memref.load %arg1[%11] : memref<16xi32, #tpu.memory_space<smem>>
    %c1_i32_4 = arith.constant 1 : i32
    %c1_i32_5 = arith.constant 1 : i32
    %c0_i32_6 = arith.constant 0 : i32
    %13 = tpu.memref_slice %arg2[%12, %c0_i32_6] : memref<128x32xf32, #tpu.memory_space<any>> -> memref<1x32xf32, #tpu.memory_space<any>>
    %14 = tpu.memref_squeeze %13 : memref<1x32xf32, #tpu.memory_space<any>> -> memref<32xf32, #tpu.memory_space<any>>
    %c0_i32_7 = arith.constant 0 : i32
    %15 = tpu.memref_slice %arg4[%c1_i32_4, %c0_i32_7] : memref<16x32xf32, #tpu.memory_space<vmem>> -> memref<1x32xf32, #tpu.memory_space<vmem>>
    %16 = tpu.memref_squeeze %15 : memref<1x32xf32, #tpu.memory_space<vmem>> -> memref<32xf32, #tpu.memory_space<vmem>>
    %17 = tpu.memref_slice %arg5[%c1_i32_5] : memref<16x!tpu.dma_semaphore, #tpu.memory_space<semaphore_mem>> -> memref<1x!tpu.dma_semaphore, #tpu.memory_space<semaphore_mem>>
    %18 = tpu.memref_squeeze %17 : memref<1x!tpu.dma_semaphore, #tpu.memory_space<semaphore_mem>> -> memref<!tpu.dma_semaphore, #tpu.memory_space<semaphore_mem>>
    tpu.enqueue_dma source(%14 : memref<32xf32, #tpu.memory_space<any>>) target(%16 : memref<32xf32, #tpu.memory_space<vmem>>) target_semaphore(%18 : memref<!tpu.dma_semaphore, #tpu.memory_space<semaphore_mem>>)
    %c2_i32 = arith.constant 2 : i32
    %19 = arith.addi %0, %c2_i32 : i32
    %20 = arith.index_cast %19 : i32 to index
    %21 = memref.load %arg1[%20] : memref<16xi32, #tpu.memory_space<smem>>
    %c2_i32_8 = arith.constant 2 : i32
    %c2_i32_9 = arith.constant 2 : i32
    %c0_i32_10 = arith.constant 0 : i32
    %22 = tpu.memref_slice %arg2[%21, %c0_i32_10] : memref<128x32xf32, #tpu.memory_space<any>> -> memref<1x32xf32, #tpu.memory_space<any>>
    %23 = tpu.memref_squeeze %22 : memref<1x32xf32, #tpu.memory_space<any>> -> memref<32xf32, #tpu.memory_space<any>>
    %c0_i32_11 = arith.constant 0 : i32
    %24 = tpu.memref_slice %arg4[%c2_i32_8, %c0_i32_11] : memref<16x32xf32, #tpu.memory_space<vmem>> -> memref<1x32xf32, #tpu.memory_space<vmem>>
    %25 = tpu.memref_squeeze %24 : memref<1x32xf32, #tpu.memory_space<vmem>> -> memref<32xf32, #tpu.memory_space<vmem>>
    %26 = tpu.memref_slice %arg5[%c2_i32_9] : memref<16x!tpu.dma_semaphore, #tpu.memory_space<semaphore_mem>> -> memref<1x!tpu.dma_semaphore, #tpu.memory_space<semaphore_mem>>
    %27 = tpu.memref_squeeze %26 : memref<1x!tpu.dma_semaphore, #tpu.memory_space<semaphore_mem>> -> memref<!tpu.dma_semaphore, #tpu.memory_space<semaphore_mem>>
    tpu.enqueue_dma source(%23 : memref<32xf32, #tpu.memory_space<any>>) target(%25 : memref<32xf32, #tpu.memory_space<vmem>>) target_semaphore(%27 : memref<!tpu.dma_semaphore, #tpu.memory_space<semaphore_mem>>)
    %c3_i32 = arith.constant 3 : i32
    %28 = arith.addi %0, %c3_i32 : i32
    %29 = arith.index_cast %28 : i32 to index
    %30 = memref.load %arg1[%29] : memref<16xi32, #tpu.memory_space<smem>>
    %c3_i32_12 = arith.constant 3 : i32
    %c3_i32_13 = arith.constant 3 : i32
    %c0_i32_14 = arith.constant 0 : i32
    %31 = tpu.memref_slice %arg2[%30, %c0_i32_14] : memref<128x32xf32, #tpu.memory_space<any>> -> memref<1x32xf32, #tpu.memory_space<any>>
    %32 = tpu.memref_squeeze %31 : memref<1x32xf32, #tpu.memory_space<any>> -> memref<32xf32, #tpu.memory_space<any>>
    %c0_i32_15 = arith.constant 0 : i32
    %33 = tpu.memref_slice %arg4[%c3_i32_12, %c0_i32_15] : memref<16x32xf32, #tpu.memory_space<vmem>> -> memref<1x32xf32, #tpu.memory_space<vmem>>
    %34 = tpu.memref_squeeze %33 : memref<1x32xf32, #tpu.memory_space<vmem>> -> memref<32xf32, #tpu.memory_space<vmem>>
    %35 = tpu.memref_slice %arg5[%c3_i32_13] : memref<16x!tpu.dma_semaphore, #tpu.memory_space<semaphore_mem>> -> memref<1x!tpu.dma_semaphore, #tpu.memory_space<semaphore_mem>>
    %36 = tpu.memref_squeeze %35 : memref<1x!tpu.dma_semaphore, #tpu.memory_space<semaphore_mem>> -> memref<!tpu.dma_semaphore, #tpu.memory_space<semaphore_mem>>
    tpu.enqueue_dma source(%32 : memref<32xf32, #tpu.memory_space<any>>) target(%34 : memref<32xf32, #tpu.memory_space<vmem>>) target_semaphore(%36 : memref<!tpu.dma_semaphore, #tpu.memory_space<semaphore_mem>>)
    %c4_i32 = arith.constant 4 : i32
    %37 = arith.addi %0, %c4_i32 : i32
    %38 = arith.index_cast %37 : i32 to index
    %39 = memref.load %arg1[%38] : memref<16xi32, #tpu.memory_space<smem>>
    %c4_i32_16 = arith.constant 4 : i32
    %c4_i32_17 = arith.constant 4 : i32
    %c0_i32_18 = arith.constant 0 : i32
    %40 = tpu.memref_slice %arg2[%39, %c0_i32_18] : memref<128x32xf32, #tpu.memory_space<any>> -> memref<1x32xf32, #tpu.memory_space<any>>
    %41 = tpu.memref_squeeze %40 : memref<1x32xf32, #tpu.memory_space<any>> -> memref<32xf32, #tpu.memory_space<any>>
    %c0_i32_19 = arith.constant 0 : i32
    %42 = tpu.memref_slice %arg4[%c4_i32_16, %c0_i32_19] : memref<16x32xf32, #tpu.memory_space<vmem>> -> memref<1x32xf32, #tpu.memory_space<vmem>>
    %43 = tpu.memref_squeeze %42 : memref<1x32xf32, #tpu.memory_space<vmem>> -> memref<32xf32, #tpu.memory_space<vmem>>
    %44 = tpu.memref_slice %arg5[%c4_i32_17] : memref<16x!tpu.dma_semaphore, #tpu.memory_space<semaphore_mem>> -> memref<1x!tpu.dma_semaphore, #tpu.memory_space<semaphore_mem>>
    %45 = tpu.memref_squeeze %44 : memref<1x!tpu.dma_semaphore, #tpu.memory_space<semaphore_mem>> -> memref<!tpu.dma_semaphore, #tpu.memory_space<semaphore_mem>>
    tpu.enqueue_dma source(%41 : memref<32xf32, #tpu.memory_space<any>>) target(%43 : memref<32xf32, #tpu.memory_space<vmem>>) target_semaphore(%45 : memref<!tpu.dma_semaphore, #tpu.memory_space<semaphore_mem>>)
    %c5_i32 = arith.constant 5 : i32
    %46 = arith.addi %0, %c5_i32 : i32
    %47 = arith.index_cast %46 : i32 to index
    %48 = memref.load %arg1[%47] : memref<16xi32, #tpu.memory_space<smem>>
    %c5_i32_20 = arith.constant 5 : i32
    %c5_i32_21 = arith.constant 5 : i32
    %c0_i32_22 = arith.constant 0 : i32
    %49 = tpu.memref_slice %arg2[%48, %c0_i32_22] : memref<128x32xf32, #tpu.memory_space<any>> -> memref<1x32xf32, #tpu.memory_space<any>>
    %50 = tpu.memref_squeeze %49 : memref<1x32xf32, #tpu.memory_space<any>> -> memref<32xf32, #tpu.memory_space<any>>
    %c0_i32_23 = arith.constant 0 : i32
    %51 = tpu.memref_slice %arg4[%c5_i32_20, %c0_i32_23] : memref<16x32xf32, #tpu.memory_space<vmem>> -> memref<1x32xf32, #tpu.memory_space<vmem>>
    %52 = tpu.memref_squeeze %51 : memref<1x32xf32, #tpu.memory_space<vmem>> -> memref<32xf32, #tpu.memory_space<vmem>>
    %53 = tpu.memref_slice %arg5[%c5_i32_21] : memref<16x!tpu.dma_semaphore, #tpu.memory_space<semaphore_mem>> -> memref<1x!tpu.dma_semaphore, #tpu.memory_space<semaphore_mem>>
    %54 = tpu.memref_squeeze %53 : memref<1x!tpu.dma_semaphore, #tpu.memory_space<semaphore_mem>> -> memref<!tpu.dma_semaphore, #tpu.memory_space<semaphore_mem>>
    tpu.enqueue_dma source(%50 : memref<32xf32, #tpu.memory_space<any>>) target(%52 : memref<32xf32, #tpu.memory_space<vmem>>) target_semaphore(%54 : memref<!tpu.dma_semaphore, #tpu.memory_space<semaphore_mem>>)
    %c6_i32 = arith.constant 6 : i32
    %55 = arith.addi %0, %c6_i32 : i32
    %56 = arith.index_cast %55 : i32 to index
    %57 = memref.load %arg1[%56] : memref<16xi32, #tpu.memory_space<smem>>
    %c6_i32_24 = arith.constant 6 : i32
    %c6_i32_25 = arith.constant 6 : i32
    %c0_i32_26 = arith.constant 0 : i32
    %58 = tpu.memref_slice %arg2[%57, %c0_i32_26] : memref<128x32xf32, #tpu.memory_space<any>> -> memref<1x32xf32, #tpu.memory_space<any>>
    %59 = tpu.memref_squeeze %58 : memref<1x32xf32, #tpu.memory_space<any>> -> memref<32xf32, #tpu.memory_space<any>>
    %c0_i32_27 = arith.constant 0 : i32
    %60 = tpu.memref_slice %arg4[%c6_i32_24, %c0_i32_27] : memref<16x32xf32, #tpu.memory_space<vmem>> -> memref<1x32xf32, #tpu.memory_space<vmem>>
    %61 = tpu.memref_squeeze %60 : memref<1x32xf32, #tpu.memory_space<vmem>> -> memref<32xf32, #tpu.memory_space<vmem>>
    %62 = tpu.memref_slice %arg5[%c6_i32_25] : memref<16x!tpu.dma_semaphore, #tpu.memory_space<semaphore_mem>> -> memref<1x!tpu.dma_semaphore, #tpu.memory_space<semaphore_mem>>
    %63 = tpu.memref_squeeze %62 : memref<1x!tpu.dma_semaphore, #tpu.memory_space<semaphore_mem>> -> memref<!tpu.dma_semaphore, #tpu.memory_space<semaphore_mem>>
    tpu.enqueue_dma source(%59 : memref<32xf32, #tpu.memory_space<any>>) target(%61 : memref<32xf32, #tpu.memory_space<vmem>>) target_semaphore(%63 : memref<!tpu.dma_semaphore, #tpu.memory_space<semaphore_mem>>)
    %c7_i32 = arith.constant 7 : i32
    %64 = arith.addi %0, %c7_i32 : i32
    %65 = arith.index_cast %64 : i32 to index
    %66 = memref.load %arg1[%65] : memref<16xi32, #tpu.memory_space<smem>>
    %c7_i32_28 = arith.constant 7 : i32
    %c7_i32_29 = arith.constant 7 : i32
    %c0_i32_30 = arith.constant 0 : i32
    %67 = tpu.memref_slice %arg2[%66, %c0_i32_30] : memref<128x32xf32, #tpu.memory_space<any>> -> memref<1x32xf32, #tpu.memory_space<any>>
    %68 = tpu.memref_squeeze %67 : memref<1x32xf32, #tpu.memory_space<any>> -> memref<32xf32, #tpu.memory_space<any>>
    %c0_i32_31 = arith.constant 0 : i32
    %69 = tpu.memref_slice %arg4[%c7_i32_28, %c0_i32_31] : memref<16x32xf32, #tpu.memory_space<vmem>> -> memref<1x32xf32, #tpu.memory_space<vmem>>
    %70 = tpu.memref_squeeze %69 : memref<1x32xf32, #tpu.memory_space<vmem>> -> memref<32xf32, #tpu.memory_space<vmem>>
    %71 = tpu.memref_slice %arg5[%c7_i32_29] : memref<16x!tpu.dma_semaphore, #tpu.memory_space<semaphore_mem>> -> memref<1x!tpu.dma_semaphore, #tpu.memory_space<semaphore_mem>>
    %72 = tpu.memref_squeeze %71 : memref<1x!tpu.dma_semaphore, #tpu.memory_space<semaphore_mem>> -> memref<!tpu.dma_semaphore, #tpu.memory_space<semaphore_mem>>
    tpu.enqueue_dma source(%68 : memref<32xf32, #tpu.memory_space<any>>) target(%70 : memref<32xf32, #tpu.memory_space<vmem>>) target_semaphore(%72 : memref<!tpu.dma_semaphore, #tpu.memory_space<semaphore_mem>>)
    %c8_i32 = arith.constant 8 : i32
    %73 = arith.addi %0, %c8_i32 : i32
    %74 = arith.index_cast %73 : i32 to index
    %75 = memref.load %arg1[%74] : memref<16xi32, #tpu.memory_space<smem>>
    %c8_i32_32 = arith.constant 8 : i32
    %c8_i32_33 = arith.constant 8 : i32
    %c0_i32_34 = arith.constant 0 : i32
    %76 = tpu.memref_slice %arg2[%75, %c0_i32_34] : memref<128x32xf32, #tpu.memory_space<any>> -> memref<1x32xf32, #tpu.memory_space<any>>
    %77 = tpu.memref_squeeze %76 : memref<1x32xf32, #tpu.memory_space<any>> -> memref<32xf32, #tpu.memory_space<any>>
    %c0_i32_35 = arith.constant 0 : i32
    %78 = tpu.memref_slice %arg4[%c8_i32_32, %c0_i32_35] : memref<16x32xf32, #tpu.memory_space<vmem>> -> memref<1x32xf32, #tpu.memory_space<vmem>>
    %79 = tpu.memref_squeeze %78 : memref<1x32xf32, #tpu.memory_space<vmem>> -> memref<32xf32, #tpu.memory_space<vmem>>
    %80 = tpu.memref_slice %arg5[%c8_i32_33] : memref<16x!tpu.dma_semaphore, #tpu.memory_space<semaphore_mem>> -> memref<1x!tpu.dma_semaphore, #tpu.memory_space<semaphore_mem>>
    %81 = tpu.memref_squeeze %80 : memref<1x!tpu.dma_semaphore, #tpu.memory_space<semaphore_mem>> -> memref<!tpu.dma_semaphore, #tpu.memory_space<semaphore_mem>>
    tpu.enqueue_dma source(%77 : memref<32xf32, #tpu.memory_space<any>>) target(%79 : memref<32xf32, #tpu.memory_space<vmem>>) target_semaphore(%81 : memref<!tpu.dma_semaphore, #tpu.memory_space<semaphore_mem>>)
    %c9_i32 = arith.constant 9 : i32
    %82 = arith.addi %0, %c9_i32 : i32
    %83 = arith.index_cast %82 : i32 to index
    %84 = memref.load %arg1[%83] : memref<16xi32, #tpu.memory_space<smem>>
    %c9_i32_36 = arith.constant 9 : i32
    %c9_i32_37 = arith.constant 9 : i32
    %c0_i32_38 = arith.constant 0 : i32
    %85 = tpu.memref_slice %arg2[%84, %c0_i32_38] : memref<128x32xf32, #tpu.memory_space<any>> -> memref<1x32xf32, #tpu.memory_space<any>>
    %86 = tpu.memref_squeeze %85 : memref<1x32xf32, #tpu.memory_space<any>> -> memref<32xf32, #tpu.memory_space<any>>
    %c0_i32_39 = arith.constant 0 : i32
    %87 = tpu.memref_slice %arg4[%c9_i32_36, %c0_i32_39] : memref<16x32xf32, #tpu.memory_space<vmem>> -> memref<1x32xf32, #tpu.memory_space<vmem>>
    %88 = tpu.memref_squeeze %87 : memref<1x32xf32, #tpu.memory_space<vmem>> -> memref<32xf32, #tpu.memory_space<vmem>>
    %89 = tpu.memref_slice %arg5[%c9_i32_37] : memref<16x!tpu.dma_semaphore, #tpu.memory_space<semaphore_mem>> -> memref<1x!tpu.dma_semaphore, #tpu.memory_space<semaphore_mem>>
    %90 = tpu.memref_squeeze %89 : memref<1x!tpu.dma_semaphore, #tpu.memory_space<semaphore_mem>> -> memref<!tpu.dma_semaphore, #tpu.memory_space<semaphore_mem>>
    tpu.enqueue_dma source(%86 : memref<32xf32, #tpu.memory_space<any>>) target(%88 : memref<32xf32, #tpu.memory_space<vmem>>) target_semaphore(%90 : memref<!tpu.dma_semaphore, #tpu.memory_space<semaphore_mem>>)
    %c10_i32 = arith.constant 10 : i32
    %91 = arith.addi %0, %c10_i32 : i32
    %92 = arith.index_cast %91 : i32 to index
    %93 = memref.load %arg1[%92] : memref<16xi32, #tpu.memory_space<smem>>
    %c10_i32_40 = arith.constant 10 : i32
    %c10_i32_41 = arith.constant 10 : i32
    %c0_i32_42 = arith.constant 0 : i32
    %94 = tpu.memref_slice %arg2[%93, %c0_i32_42] : memref<128x32xf32, #tpu.memory_space<any>> -> memref<1x32xf32, #tpu.memory_space<any>>
    %95 = tpu.memref_squeeze %94 : memref<1x32xf32, #tpu.memory_space<any>> -> memref<32xf32, #tpu.memory_space<any>>
    %c0_i32_43 = arith.constant 0 : i32
    %96 = tpu.memref_slice %arg4[%c10_i32_40, %c0_i32_43] : memref<16x32xf32, #tpu.memory_space<vmem>> -> memref<1x32xf32, #tpu.memory_space<vmem>>
    %97 = tpu.memref_squeeze %96 : memref<1x32xf32, #tpu.memory_space<vmem>> -> memref<32xf32, #tpu.memory_space<vmem>>
    %98 = tpu.memref_slice %arg5[%c10_i32_41] : memref<16x!tpu.dma_semaphore, #tpu.memory_space<semaphore_mem>> -> memref<1x!tpu.dma_semaphore, #tpu.memory_space<semaphore_mem>>
    %99 = tpu.memref_squeeze %98 : memref<1x!tpu.dma_semaphore, #tpu.memory_space<semaphore_mem>> -> memref<!tpu.dma_semaphore, #tpu.memory_space<semaphore_mem>>
    tpu.enqueue_dma source(%95 : memref<32xf32, #tpu.memory_space<any>>) target(%97 : memref<32xf32, #tpu.memory_space<vmem>>) target_semaphore(%99 : memref<!tpu.dma_semaphore, #tpu.memory_space<semaphore_mem>>)
    %c11_i32 = arith.constant 11 : i32
    %100 = arith.addi %0, %c11_i32 : i32
    %101 = arith.index_cast %100 : i32 to index
    %102 = memref.load %arg1[%101] : memref<16xi32, #tpu.memory_space<smem>>
    %c11_i32_44 = arith.constant 11 : i32
    %c11_i32_45 = arith.constant 11 : i32
    %c0_i32_46 = arith.constant 0 : i32
    %103 = tpu.memref_slice %arg2[%102, %c0_i32_46] : memref<128x32xf32, #tpu.memory_space<any>> -> memref<1x32xf32, #tpu.memory_space<any>>
    %104 = tpu.memref_squeeze %103 : memref<1x32xf32, #tpu.memory_space<any>> -> memref<32xf32, #tpu.memory_space<any>>
    %c0_i32_47 = arith.constant 0 : i32
    %105 = tpu.memref_slice %arg4[%c11_i32_44, %c0_i32_47] : memref<16x32xf32, #tpu.memory_space<vmem>> -> memref<1x32xf32, #tpu.memory_space<vmem>>
    %106 = tpu.memref_squeeze %105 : memref<1x32xf32, #tpu.memory_space<vmem>> -> memref<32xf32, #tpu.memory_space<vmem>>
    %107 = tpu.memref_slice %arg5[%c11_i32_45] : memref<16x!tpu.dma_semaphore, #tpu.memory_space<semaphore_mem>> -> memref<1x!tpu.dma_semaphore, #tpu.memory_space<semaphore_mem>>
    %108 = tpu.memref_squeeze %107 : memref<1x!tpu.dma_semaphore, #tpu.memory_space<semaphore_mem>> -> memref<!tpu.dma_semaphore, #tpu.memory_space<semaphore_mem>>
    tpu.enqueue_dma source(%104 : memref<32xf32, #tpu.memory_space<any>>) target(%106 : memref<32xf32, #tpu.memory_space<vmem>>) target_semaphore(%108 : memref<!tpu.dma_semaphore, #tpu.memory_space<semaphore_mem>>)
    %c12_i32 = arith.constant 12 : i32
    %109 = arith.addi %0, %c12_i32 : i32
    %110 = arith.index_cast %109 : i32 to index
    %111 = memref.load %arg1[%110] : memref<16xi32, #tpu.memory_space<smem>>
    %c12_i32_48 = arith.constant 12 : i32
    %c12_i32_49 = arith.constant 12 : i32
    %c0_i32_50 = arith.constant 0 : i32
    %112 = tpu.memref_slice %arg2[%111, %c0_i32_50] : memref<128x32xf32, #tpu.memory_space<any>> -> memref<1x32xf32, #tpu.memory_space<any>>
    %113 = tpu.memref_squeeze %112 : memref<1x32xf32, #tpu.memory_space<any>> -> memref<32xf32, #tpu.memory_space<any>>
    %c0_i32_51 = arith.constant 0 : i32
    %114 = tpu.memref_slice %arg4[%c12_i32_48, %c0_i32_51] : memref<16x32xf32, #tpu.memory_space<vmem>> -> memref<1x32xf32, #tpu.memory_space<vmem>>
    %115 = tpu.memref_squeeze %114 : memref<1x32xf32, #tpu.memory_space<vmem>> -> memref<32xf32, #tpu.memory_space<vmem>>
    %116 = tpu.memref_slice %arg5[%c12_i32_49] : memref<16x!tpu.dma_semaphore, #tpu.memory_space<semaphore_mem>> -> memref<1x!tpu.dma_semaphore, #tpu.memory_space<semaphore_mem>>
    %117 = tpu.memref_squeeze %116 : memref<1x!tpu.dma_semaphore, #tpu.memory_space<semaphore_mem>> -> memref<!tpu.dma_semaphore, #tpu.memory_space<semaphore_mem>>
    tpu.enqueue_dma source(%113 : memref<32xf32, #tpu.memory_space<any>>) target(%115 : memref<32xf32, #tpu.memory_space<vmem>>) target_semaphore(%117 : memref<!tpu.dma_semaphore, #tpu.memory_space<semaphore_mem>>)
    %c13_i32 = arith.constant 13 : i32
    %118 = arith.addi %0, %c13_i32 : i32
    %119 = arith.index_cast %118 : i32 to index
    %120 = memref.load %arg1[%119] : memref<16xi32, #tpu.memory_space<smem>>
    %c13_i32_52 = arith.constant 13 : i32
    %c13_i32_53 = arith.constant 13 : i32
    %c0_i32_54 = arith.constant 0 : i32
    %121 = tpu.memref_slice %arg2[%120, %c0_i32_54] : memref<128x32xf32, #tpu.memory_space<any>> -> memref<1x32xf32, #tpu.memory_space<any>>
    %122 = tpu.memref_squeeze %121 : memref<1x32xf32, #tpu.memory_space<any>> -> memref<32xf32, #tpu.memory_space<any>>
    %c0_i32_55 = arith.constant 0 : i32
    %123 = tpu.memref_slice %arg4[%c13_i32_52, %c0_i32_55] : memref<16x32xf32, #tpu.memory_space<vmem>> -> memref<1x32xf32, #tpu.memory_space<vmem>>
    %124 = tpu.memref_squeeze %123 : memref<1x32xf32, #tpu.memory_space<vmem>> -> memref<32xf32, #tpu.memory_space<vmem>>
    %125 = tpu.memref_slice %arg5[%c13_i32_53] : memref<16x!tpu.dma_semaphore, #tpu.memory_space<semaphore_mem>> -> memref<1x!tpu.dma_semaphore, #tpu.memory_space<semaphore_mem>>
    %126 = tpu.memref_squeeze %125 : memref<1x!tpu.dma_semaphore, #tpu.memory_space<semaphore_mem>> -> memref<!tpu.dma_semaphore, #tpu.memory_space<semaphore_mem>>
    tpu.enqueue_dma source(%122 : memref<32xf32, #tpu.memory_space<any>>) target(%124 : memref<32xf32, #tpu.memory_space<vmem>>) target_semaphore(%126 : memref<!tpu.dma_semaphore, #tpu.memory_space<semaphore_mem>>)
    %c14_i32 = arith.constant 14 : i32
    %127 = arith.addi %0, %c14_i32 : i32
    %128 = arith.index_cast %127 : i32 to index
    %129 = memref.load %arg1[%128] : memref<16xi32, #tpu.memory_space<smem>>
    %c14_i32_56 = arith.constant 14 : i32
    %c14_i32_57 = arith.constant 14 : i32
    %c0_i32_58 = arith.constant 0 : i32
    %130 = tpu.memref_slice %arg2[%129, %c0_i32_58] : memref<128x32xf32, #tpu.memory_space<any>> -> memref<1x32xf32, #tpu.memory_space<any>>
    %131 = tpu.memref_squeeze %130 : memref<1x32xf32, #tpu.memory_space<any>> -> memref<32xf32, #tpu.memory_space<any>>
    %c0_i32_59 = arith.constant 0 : i32
    %132 = tpu.memref_slice %arg4[%c14_i32_56, %c0_i32_59] : memref<16x32xf32, #tpu.memory_space<vmem>> -> memref<1x32xf32, #tpu.memory_space<vmem>>
    %133 = tpu.memref_squeeze %132 : memref<1x32xf32, #tpu.memory_space<vmem>> -> memref<32xf32, #tpu.memory_space<vmem>>
    %134 = tpu.memref_slice %arg5[%c14_i32_57] : memref<16x!tpu.dma_semaphore, #tpu.memory_space<semaphore_mem>> -> memref<1x!tpu.dma_semaphore, #tpu.memory_space<semaphore_mem>>
    %135 = tpu.memref_squeeze %134 : memref<1x!tpu.dma_semaphore, #tpu.memory_space<semaphore_mem>> -> memref<!tpu.dma_semaphore, #tpu.memory_space<semaphore_mem>>
    tpu.enqueue_dma source(%131 : memref<32xf32, #tpu.memory_space<any>>) target(%133 : memref<32xf32, #tpu.memory_space<vmem>>) target_semaphore(%135 : memref<!tpu.dma_semaphore, #tpu.memory_space<semaphore_mem>>)
    %c15_i32 = arith.constant 15 : i32
    %136 = arith.addi %0, %c15_i32 : i32
    %137 = arith.index_cast %136 : i32 to index
    %138 = memref.load %arg1[%137] : memref<16xi32, #tpu.memory_space<smem>>
    %c15_i32_60 = arith.constant 15 : i32
    %c15_i32_61 = arith.constant 15 : i32
    %c0_i32_62 = arith.constant 0 : i32
    %139 = tpu.memref_slice %arg2[%138, %c0_i32_62] : memref<128x32xf32, #tpu.memory_space<any>> -> memref<1x32xf32, #tpu.memory_space<any>>
    %140 = tpu.memref_squeeze %139 : memref<1x32xf32, #tpu.memory_space<any>> -> memref<32xf32, #tpu.memory_space<any>>
    %c0_i32_63 = arith.constant 0 : i32
    %141 = tpu.memref_slice %arg4[%c15_i32_60, %c0_i32_63] : memref<16x32xf32, #tpu.memory_space<vmem>> -> memref<1x32xf32, #tpu.memory_space<vmem>>
    %142 = tpu.memref_squeeze %141 : memref<1x32xf32, #tpu.memory_space<vmem>> -> memref<32xf32, #tpu.memory_space<vmem>>
    %143 = tpu.memref_slice %arg5[%c15_i32_61] : memref<16x!tpu.dma_semaphore, #tpu.memory_space<semaphore_mem>> -> memref<1x!tpu.dma_semaphore, #tpu.memory_space<semaphore_mem>>
    %144 = tpu.memref_squeeze %143 : memref<1x!tpu.dma_semaphore, #tpu.memory_space<semaphore_mem>> -> memref<!tpu.dma_semaphore, #tpu.memory_space<semaphore_mem>>
    tpu.enqueue_dma source(%140 : memref<32xf32, #tpu.memory_space<any>>) target(%142 : memref<32xf32, #tpu.memory_space<vmem>>) target_semaphore(%144 : memref<!tpu.dma_semaphore, #tpu.memory_space<semaphore_mem>>)
    %c0_i32_64 = arith.constant 0 : i32
    %c0_i32_65 = arith.constant 0 : i32
    %c0_i32_66 = arith.constant 0 : i32
    %c0_i32_67 = arith.constant 0 : i32
    %145 = tpu.memref_slice %arg2[%c0_i32_64, %c0_i32_67] : memref<128x32xf32, #tpu.memory_space<any>> -> memref<1x32xf32, #tpu.memory_space<any>>
    %146 = tpu.memref_squeeze %145 : memref<1x32xf32, #tpu.memory_space<any>> -> memref<32xf32, #tpu.memory_space<any>>
    %c0_i32_68 = arith.constant 0 : i32
    %147 = tpu.memref_slice %arg4[%c0_i32_65, %c0_i32_68] : memref<16x32xf32, #tpu.memory_space<vmem>> -> memref<1x32xf32, #tpu.memory_space<vmem>>
    %148 = tpu.memref_squeeze %147 : memref<1x32xf32, #tpu.memory_space<vmem>> -> memref<32xf32, #tpu.memory_space<vmem>>
    %149 = tpu.memref_slice %arg5[%c0_i32_66] : memref<16x!tpu.dma_semaphore, #tpu.memory_space<semaphore_mem>> -> memref<1x!tpu.dma_semaphore, #tpu.memory_space<semaphore_mem>>
    %150 = tpu.memref_squeeze %149 : memref<1x!tpu.dma_semaphore, #tpu.memory_space<semaphore_mem>> -> memref<!tpu.dma_semaphore, #tpu.memory_space<semaphore_mem>>
    tpu.wait_dma2 semaphore(%150 : memref<!tpu.dma_semaphore, #tpu.memory_space<semaphore_mem>>) src(%146 : memref<32xf32, #tpu.memory_space<any>>) dst(%148 : memref<32xf32, #tpu.memory_space<vmem>>)
    %c0_i32_69 = arith.constant 0 : i32
    %c1_i32_70 = arith.constant 1 : i32
    %c1_i32_71 = arith.constant 1 : i32
    %c0_i32_72 = arith.constant 0 : i32
    %151 = tpu.memref_slice %arg2[%c0_i32_69, %c0_i32_72] : memref<128x32xf32, #tpu.memory_space<any>> -> memref<1x32xf32, #tpu.memory_space<any>>
    %152 = tpu.memref_squeeze %151 : memref<1x32xf32, #tpu.memory_space<any>> -> memref<32xf32, #tpu.memory_space<any>>
    %c0_i32_73 = arith.constant 0 : i32
    %153 = tpu.memref_slice %arg4[%c1_i32_70, %c0_i32_73] : memref<16x32xf32, #tpu.memory_space<vmem>> -> memref<1x32xf32, #tpu.memory_space<vmem>>
    %154 = tpu.memref_squeeze %153 : memref<1x32xf32, #tpu.memory_space<vmem>> -> memref<32xf32, #tpu.memory_space<vmem>>
    %155 = tpu.memref_slice %arg5[%c1_i32_71] : memref<16x!tpu.dma_semaphore, #tpu.memory_space<semaphore_mem>> -> memref<1x!tpu.dma_semaphore, #tpu.memory_space<semaphore_mem>>
    %156 = tpu.memref_squeeze %155 : memref<1x!tpu.dma_semaphore, #tpu.memory_space<semaphore_mem>> -> memref<!tpu.dma_semaphore, #tpu.memory_space<semaphore_mem>>
    tpu.wait_dma2 semaphore(%156 : memref<!tpu.dma_semaphore, #tpu.memory_space<semaphore_mem>>) src(%152 : memref<32xf32, #tpu.memory_space<any>>) dst(%154 : memref<32xf32, #tpu.memory_space<vmem>>)
    %c0_i32_74 = arith.constant 0 : i32
    %c2_i32_75 = arith.constant 2 : i32
    %c2_i32_76 = arith.constant 2 : i32
    %c0_i32_77 = arith.constant 0 : i32
    %157 = tpu.memref_slice %arg2[%c0_i32_74, %c0_i32_77] : memref<128x32xf32, #tpu.memory_space<any>> -> memref<1x32xf32, #tpu.memory_space<any>>
    %158 = tpu.memref_squeeze %157 : memref<1x32xf32, #tpu.memory_space<any>> -> memref<32xf32, #tpu.memory_space<any>>
    %c0_i32_78 = arith.constant 0 : i32
    %159 = tpu.memref_slice %arg4[%c2_i32_75, %c0_i32_78] : memref<16x32xf32, #tpu.memory_space<vmem>> -> memref<1x32xf32, #tpu.memory_space<vmem>>
    %160 = tpu.memref_squeeze %159 : memref<1x32xf32, #tpu.memory_space<vmem>> -> memref<32xf32, #tpu.memory_space<vmem>>
    %161 = tpu.memref_slice %arg5[%c2_i32_76] : memref<16x!tpu.dma_semaphore, #tpu.memory_space<semaphore_mem>> -> memref<1x!tpu.dma_semaphore, #tpu.memory_space<semaphore_mem>>
    %162 = tpu.memref_squeeze %161 : memref<1x!tpu.dma_semaphore, #tpu.memory_space<semaphore_mem>> -> memref<!tpu.dma_semaphore, #tpu.memory_space<semaphore_mem>>
    tpu.wait_dma2 semaphore(%162 : memref<!tpu.dma_semaphore, #tpu.memory_space<semaphore_mem>>) src(%158 : memref<32xf32, #tpu.memory_space<any>>) dst(%160 : memref<32xf32, #tpu.memory_space<vmem>>)
    %c0_i32_79 = arith.constant 0 : i32
    %c3_i32_80 = arith.constant 3 : i32
    %c3_i32_81 = arith.constant 3 : i32
    %c0_i32_82 = arith.constant 0 : i32
    %163 = tpu.memref_slice %arg2[%c0_i32_79, %c0_i32_82] : memref<128x32xf32, #tpu.memory_space<any>> -> memref<1x32xf32, #tpu.memory_space<any>>
    %164 = tpu.memref_squeeze %163 : memref<1x32xf32, #tpu.memory_space<any>> -> memref<32xf32, #tpu.memory_space<any>>
    %c0_i32_83 = arith.constant 0 : i32
    %165 = tpu.memref_slice %arg4[%c3_i32_80, %c0_i32_83] : memref<16x32xf32, #tpu.memory_space<vmem>> -> memref<1x32xf32, #tpu.memory_space<vmem>>
    %166 = tpu.memref_squeeze %165 : memref<1x32xf32, #tpu.memory_space<vmem>> -> memref<32xf32, #tpu.memory_space<vmem>>
    %167 = tpu.memref_slice %arg5[%c3_i32_81] : memref<16x!tpu.dma_semaphore, #tpu.memory_space<semaphore_mem>> -> memref<1x!tpu.dma_semaphore, #tpu.memory_space<semaphore_mem>>
    %168 = tpu.memref_squeeze %167 : memref<1x!tpu.dma_semaphore, #tpu.memory_space<semaphore_mem>> -> memref<!tpu.dma_semaphore, #tpu.memory_space<semaphore_mem>>
    tpu.wait_dma2 semaphore(%168 : memref<!tpu.dma_semaphore, #tpu.memory_space<semaphore_mem>>) src(%164 : memref<32xf32, #tpu.memory_space<any>>) dst(%166 : memref<32xf32, #tpu.memory_space<vmem>>)
    %c0_i32_84 = arith.constant 0 : i32
    %c4_i32_85 = arith.constant 4 : i32
    %c4_i32_86 = arith.constant 4 : i32
    %c0_i32_87 = arith.constant 0 : i32
    %169 = tpu.memref_slice %arg2[%c0_i32_84, %c0_i32_87] : memref<128x32xf32, #tpu.memory_space<any>> -> memref<1x32xf32, #tpu.memory_space<any>>
    %170 = tpu.memref_squeeze %169 : memref<1x32xf32, #tpu.memory_space<any>> -> memref<32xf32, #tpu.memory_space<any>>
    %c0_i32_88 = arith.constant 0 : i32
    %171 = tpu.memref_slice %arg4[%c4_i32_85, %c0_i32_88] : memref<16x32xf32, #tpu.memory_space<vmem>> -> memref<1x32xf32, #tpu.memory_space<vmem>>
    %172 = tpu.memref_squeeze %171 : memref<1x32xf32, #tpu.memory_space<vmem>> -> memref<32xf32, #tpu.memory_space<vmem>>
    %173 = tpu.memref_slice %arg5[%c4_i32_86] : memref<16x!tpu.dma_semaphore, #tpu.memory_space<semaphore_mem>> -> memref<1x!tpu.dma_semaphore, #tpu.memory_space<semaphore_mem>>
    %174 = tpu.memref_squeeze %173 : memref<1x!tpu.dma_semaphore, #tpu.memory_space<semaphore_mem>> -> memref<!tpu.dma_semaphore, #tpu.memory_space<semaphore_mem>>
    tpu.wait_dma2 semaphore(%174 : memref<!tpu.dma_semaphore, #tpu.memory_space<semaphore_mem>>) src(%170 : memref<32xf32, #tpu.memory_space<any>>) dst(%172 : memref<32xf32, #tpu.memory_space<vmem>>)
    %c0_i32_89 = arith.constant 0 : i32
    %c5_i32_90 = arith.constant 5 : i32
    %c5_i32_91 = arith.constant 5 : i32
    %c0_i32_92 = arith.constant 0 : i32
    %175 = tpu.memref_slice %arg2[%c0_i32_89, %c0_i32_92] : memref<128x32xf32, #tpu.memory_space<any>> -> memref<1x32xf32, #tpu.memory_space<any>>
    %176 = tpu.memref_squeeze %175 : memref<1x32xf32, #tpu.memory_space<any>> -> memref<32xf32, #tpu.memory_space<any>>
    %c0_i32_93 = arith.constant 0 : i32
    %177 = tpu.memref_slice %arg4[%c5_i32_90, %c0_i32_93] : memref<16x32xf32, #tpu.memory_space<vmem>> -> memref<1x32xf32, #tpu.memory_space<vmem>>
    %178 = tpu.memref_squeeze %177 : memref<1x32xf32, #tpu.memory_space<vmem>> -> memref<32xf32, #tpu.memory_space<vmem>>
    %179 = tpu.memref_slice %arg5[%c5_i32_91] : memref<16x!tpu.dma_semaphore, #tpu.memory_space<semaphore_mem>> -> memref<1x!tpu.dma_semaphore, #tpu.memory_space<semaphore_mem>>
    %180 = tpu.memref_squeeze %179 : memref<1x!tpu.dma_semaphore, #tpu.memory_space<semaphore_mem>> -> memref<!tpu.dma_semaphore, #tpu.memory_space<semaphore_mem>>
    tpu.wait_dma2 semaphore(%180 : memref<!tpu.dma_semaphore, #tpu.memory_space<semaphore_mem>>) src(%176 : memref<32xf32, #tpu.memory_space<any>>) dst(%178 : memref<32xf32, #tpu.memory_space<vmem>>)
    %c0_i32_94 = arith.constant 0 : i32
    %c6_i32_95 = arith.constant 6 : i32
    %c6_i32_96 = arith.constant 6 : i32
    %c0_i32_97 = arith.constant 0 : i32
    %181 = tpu.memref_slice %arg2[%c0_i32_94, %c0_i32_97] : memref<128x32xf32, #tpu.memory_space<any>> -> memref<1x32xf32, #tpu.memory_space<any>>
    %182 = tpu.memref_squeeze %181 : memref<1x32xf32, #tpu.memory_space<any>> -> memref<32xf32, #tpu.memory_space<any>>
    %c0_i32_98 = arith.constant 0 : i32
    %183 = tpu.memref_slice %arg4[%c6_i32_95, %c0_i32_98] : memref<16x32xf32, #tpu.memory_space<vmem>> -> memref<1x32xf32, #tpu.memory_space<vmem>>
    %184 = tpu.memref_squeeze %183 : memref<1x32xf32, #tpu.memory_space<vmem>> -> memref<32xf32, #tpu.memory_space<vmem>>
    %185 = tpu.memref_slice %arg5[%c6_i32_96] : memref<16x!tpu.dma_semaphore, #tpu.memory_space<semaphore_mem>> -> memref<1x!tpu.dma_semaphore, #tpu.memory_space<semaphore_mem>>
    %186 = tpu.memref_squeeze %185 : memref<1x!tpu.dma_semaphore, #tpu.memory_space<semaphore_mem>> -> memref<!tpu.dma_semaphore, #tpu.memory_space<semaphore_mem>>
    tpu.wait_dma2 semaphore(%186 : memref<!tpu.dma_semaphore, #tpu.memory_space<semaphore_mem>>) src(%182 : memref<32xf32, #tpu.memory_space<any>>) dst(%184 : memref<32xf32, #tpu.memory_space<vmem>>)
    %c0_i32_99 = arith.constant 0 : i32
    %c7_i32_100 = arith.constant 7 : i32
    %c7_i32_101 = arith.constant 7 : i32
    %c0_i32_102 = arith.constant 0 : i32
    %187 = tpu.memref_slice %arg2[%c0_i32_99, %c0_i32_102] : memref<128x32xf32, #tpu.memory_space<any>> -> memref<1x32xf32, #tpu.memory_space<any>>
    %188 = tpu.memref_squeeze %187 : memref<1x32xf32, #tpu.memory_space<any>> -> memref<32xf32, #tpu.memory_space<any>>
    %c0_i32_103 = arith.constant 0 : i32
    %189 = tpu.memref_slice %arg4[%c7_i32_100, %c0_i32_103] : memref<16x32xf32, #tpu.memory_space<vmem>> -> memref<1x32xf32, #tpu.memory_space<vmem>>
    %190 = tpu.memref_squeeze %189 : memref<1x32xf32, #tpu.memory_space<vmem>> -> memref<32xf32, #tpu.memory_space<vmem>>
    %191 = tpu.memref_slice %arg5[%c7_i32_101] : memref<16x!tpu.dma_semaphore, #tpu.memory_space<semaphore_mem>> -> memref<1x!tpu.dma_semaphore, #tpu.memory_space<semaphore_mem>>
    %192 = tpu.memref_squeeze %191 : memref<1x!tpu.dma_semaphore, #tpu.memory_space<semaphore_mem>> -> memref<!tpu.dma_semaphore, #tpu.memory_space<semaphore_mem>>
    tpu.wait_dma2 semaphore(%192 : memref<!tpu.dma_semaphore, #tpu.memory_space<semaphore_mem>>) src(%188 : memref<32xf32, #tpu.memory_space<any>>) dst(%190 : memref<32xf32, #tpu.memory_space<vmem>>)
    %c0_i32_104 = arith.constant 0 : i32
    %c8_i32_105 = arith.constant 8 : i32
    %c8_i32_106 = arith.constant 8 : i32
    %c0_i32_107 = arith.constant 0 : i32
    %193 = tpu.memref_slice %arg2[%c0_i32_104, %c0_i32_107] : memref<128x32xf32, #tpu.memory_space<any>> -> memref<1x32xf32, #tpu.memory_space<any>>
    %194 = tpu.memref_squeeze %193 : memref<1x32xf32, #tpu.memory_space<any>> -> memref<32xf32, #tpu.memory_space<any>>
    %c0_i32_108 = arith.constant 0 : i32
    %195 = tpu.memref_slice %arg4[%c8_i32_105, %c0_i32_108] : memref<16x32xf32, #tpu.memory_space<vmem>> -> memref<1x32xf32, #tpu.memory_space<vmem>>
    %196 = tpu.memref_squeeze %195 : memref<1x32xf32, #tpu.memory_space<vmem>> -> memref<32xf32, #tpu.memory_space<vmem>>
    %197 = tpu.memref_slice %arg5[%c8_i32_106] : memref<16x!tpu.dma_semaphore, #tpu.memory_space<semaphore_mem>> -> memref<1x!tpu.dma_semaphore, #tpu.memory_space<semaphore_mem>>
    %198 = tpu.memref_squeeze %197 : memref<1x!tpu.dma_semaphore, #tpu.memory_space<semaphore_mem>> -> memref<!tpu.dma_semaphore, #tpu.memory_space<semaphore_mem>>
    tpu.wait_dma2 semaphore(%198 : memref<!tpu.dma_semaphore, #tpu.memory_space<semaphore_mem>>) src(%194 : memref<32xf32, #tpu.memory_space<any>>) dst(%196 : memref<32xf32, #tpu.memory_space<vmem>>)
    %c0_i32_109 = arith.constant 0 : i32
    %c9_i32_110 = arith.constant 9 : i32
    %c9_i32_111 = arith.constant 9 : i32
    %c0_i32_112 = arith.constant 0 : i32
    %199 = tpu.memref_slice %arg2[%c0_i32_109, %c0_i32_112] : memref<128x32xf32, #tpu.memory_space<any>> -> memref<1x32xf32, #tpu.memory_space<any>>
    %200 = tpu.memref_squeeze %199 : memref<1x32xf32, #tpu.memory_space<any>> -> memref<32xf32, #tpu.memory_space<any>>
    %c0_i32_113 = arith.constant 0 : i32
    %201 = tpu.memref_slice %arg4[%c9_i32_110, %c0_i32_113] : memref<16x32xf32, #tpu.memory_space<vmem>> -> memref<1x32xf32, #tpu.memory_space<vmem>>
    %202 = tpu.memref_squeeze %201 : memref<1x32xf32, #tpu.memory_space<vmem>> -> memref<32xf32, #tpu.memory_space<vmem>>
    %203 = tpu.memref_slice %arg5[%c9_i32_111] : memref<16x!tpu.dma_semaphore, #tpu.memory_space<semaphore_mem>> -> memref<1x!tpu.dma_semaphore, #tpu.memory_space<semaphore_mem>>
    %204 = tpu.memref_squeeze %203 : memref<1x!tpu.dma_semaphore, #tpu.memory_space<semaphore_mem>> -> memref<!tpu.dma_semaphore, #tpu.memory_space<semaphore_mem>>
    tpu.wait_dma2 semaphore(%204 : memref<!tpu.dma_semaphore, #tpu.memory_space<semaphore_mem>>) src(%200 : memref<32xf32, #tpu.memory_space<any>>) dst(%202 : memref<32xf32, #tpu.memory_space<vmem>>)
    %c0_i32_114 = arith.constant 0 : i32
    %c10_i32_115 = arith.constant 10 : i32
    %c10_i32_116 = arith.constant 10 : i32
    %c0_i32_117 = arith.constant 0 : i32
    %205 = tpu.memref_slice %arg2[%c0_i32_114, %c0_i32_117] : memref<128x32xf32, #tpu.memory_space<any>> -> memref<1x32xf32, #tpu.memory_space<any>>
    %206 = tpu.memref_squeeze %205 : memref<1x32xf32, #tpu.memory_space<any>> -> memref<32xf32, #tpu.memory_space<any>>
    %c0_i32_118 = arith.constant 0 : i32
    %207 = tpu.memref_slice %arg4[%c10_i32_115, %c0_i32_118] : memref<16x32xf32, #tpu.memory_space<vmem>> -> memref<1x32xf32, #tpu.memory_space<vmem>>
    %208 = tpu.memref_squeeze %207 : memref<1x32xf32, #tpu.memory_space<vmem>> -> memref<32xf32, #tpu.memory_space<vmem>>
    %209 = tpu.memref_slice %arg5[%c10_i32_116] : memref<16x!tpu.dma_semaphore, #tpu.memory_space<semaphore_mem>> -> memref<1x!tpu.dma_semaphore, #tpu.memory_space<semaphore_mem>>
    %210 = tpu.memref_squeeze %209 : memref<1x!tpu.dma_semaphore, #tpu.memory_space<semaphore_mem>> -> memref<!tpu.dma_semaphore, #tpu.memory_space<semaphore_mem>>
    tpu.wait_dma2 semaphore(%210 : memref<!tpu.dma_semaphore, #tpu.memory_space<semaphore_mem>>) src(%206 : memref<32xf32, #tpu.memory_space<any>>) dst(%208 : memref<32xf32, #tpu.memory_space<vmem>>)
    %c0_i32_119 = arith.constant 0 : i32
    %c11_i32_120 = arith.constant 11 : i32
    %c11_i32_121 = arith.constant 11 : i32
    %c0_i32_122 = arith.constant 0 : i32
    %211 = tpu.memref_slice %arg2[%c0_i32_119, %c0_i32_122] : memref<128x32xf32, #tpu.memory_space<any>> -> memref<1x32xf32, #tpu.memory_space<any>>
    %212 = tpu.memref_squeeze %211 : memref<1x32xf32, #tpu.memory_space<any>> -> memref<32xf32, #tpu.memory_space<any>>
    %c0_i32_123 = arith.constant 0 : i32
    %213 = tpu.memref_slice %arg4[%c11_i32_120, %c0_i32_123] : memref<16x32xf32, #tpu.memory_space<vmem>> -> memref<1x32xf32, #tpu.memory_space<vmem>>
    %214 = tpu.memref_squeeze %213 : memref<1x32xf32, #tpu.memory_space<vmem>> -> memref<32xf32, #tpu.memory_space<vmem>>
    %215 = tpu.memref_slice %arg5[%c11_i32_121] : memref<16x!tpu.dma_semaphore, #tpu.memory_space<semaphore_mem>> -> memref<1x!tpu.dma_semaphore, #tpu.memory_space<semaphore_mem>>
    %216 = tpu.memref_squeeze %215 : memref<1x!tpu.dma_semaphore, #tpu.memory_space<semaphore_mem>> -> memref<!tpu.dma_semaphore, #tpu.memory_space<semaphore_mem>>
    tpu.wait_dma2 semaphore(%216 : memref<!tpu.dma_semaphore, #tpu.memory_space<semaphore_mem>>) src(%212 : memref<32xf32, #tpu.memory_space<any>>) dst(%214 : memref<32xf32, #tpu.memory_space<vmem>>)
    %c0_i32_124 = arith.constant 0 : i32
    %c12_i32_125 = arith.constant 12 : i32
    %c12_i32_126 = arith.constant 12 : i32
    %c0_i32_127 = arith.constant 0 : i32
    %217 = tpu.memref_slice %arg2[%c0_i32_124, %c0_i32_127] : memref<128x32xf32, #tpu.memory_space<any>> -> memref<1x32xf32, #tpu.memory_space<any>>
    %218 = tpu.memref_squeeze %217 : memref<1x32xf32, #tpu.memory_space<any>> -> memref<32xf32, #tpu.memory_space<any>>
    %c0_i32_128 = arith.constant 0 : i32
    %219 = tpu.memref_slice %arg4[%c12_i32_125, %c0_i32_128] : memref<16x32xf32, #tpu.memory_space<vmem>> -> memref<1x32xf32, #tpu.memory_space<vmem>>
    %220 = tpu.memref_squeeze %219 : memref<1x32xf32, #tpu.memory_space<vmem>> -> memref<32xf32, #tpu.memory_space<vmem>>
    %221 = tpu.memref_slice %arg5[%c12_i32_126] : memref<16x!tpu.dma_semaphore, #tpu.memory_space<semaphore_mem>> -> memref<1x!tpu.dma_semaphore, #tpu.memory_space<semaphore_mem>>
    %222 = tpu.memref_squeeze %221 : memref<1x!tpu.dma_semaphore, #tpu.memory_space<semaphore_mem>> -> memref<!tpu.dma_semaphore, #tpu.memory_space<semaphore_mem>>
    tpu.wait_dma2 semaphore(%222 : memref<!tpu.dma_semaphore, #tpu.memory_space<semaphore_mem>>) src(%218 : memref<32xf32, #tpu.memory_space<any>>) dst(%220 : memref<32xf32, #tpu.memory_space<vmem>>)
    %c0_i32_129 = arith.constant 0 : i32
    %c13_i32_130 = arith.constant 13 : i32
    %c13_i32_131 = arith.constant 13 : i32
    %c0_i32_132 = arith.constant 0 : i32
    %223 = tpu.memref_slice %arg2[%c0_i32_129, %c0_i32_132] : memref<128x32xf32, #tpu.memory_space<any>> -> memref<1x32xf32, #tpu.memory_space<any>>
    %224 = tpu.memref_squeeze %223 : memref<1x32xf32, #tpu.memory_space<any>> -> memref<32xf32, #tpu.memory_space<any>>
    %c0_i32_133 = arith.constant 0 : i32
    %225 = tpu.memref_slice %arg4[%c13_i32_130, %c0_i32_133] : memref<16x32xf32, #tpu.memory_space<vmem>> -> memref<1x32xf32, #tpu.memory_space<vmem>>
    %226 = tpu.memref_squeeze %225 : memref<1x32xf32, #tpu.memory_space<vmem>> -> memref<32xf32, #tpu.memory_space<vmem>>
    %227 = tpu.memref_slice %arg5[%c13_i32_131] : memref<16x!tpu.dma_semaphore, #tpu.memory_space<semaphore_mem>> -> memref<1x!tpu.dma_semaphore, #tpu.memory_space<semaphore_mem>>
    %228 = tpu.memref_squeeze %227 : memref<1x!tpu.dma_semaphore, #tpu.memory_space<semaphore_mem>> -> memref<!tpu.dma_semaphore, #tpu.memory_space<semaphore_mem>>
    tpu.wait_dma2 semaphore(%228 : memref<!tpu.dma_semaphore, #tpu.memory_space<semaphore_mem>>) src(%224 : memref<32xf32, #tpu.memory_space<any>>) dst(%226 : memref<32xf32, #tpu.memory_space<vmem>>)
    %c0_i32_134 = arith.constant 0 : i32
    %c14_i32_135 = arith.constant 14 : i32
    %c14_i32_136 = arith.constant 14 : i32
    %c0_i32_137 = arith.constant 0 : i32
    %229 = tpu.memref_slice %arg2[%c0_i32_134, %c0_i32_137] : memref<128x32xf32, #tpu.memory_space<any>> -> memref<1x32xf32, #tpu.memory_space<any>>
    %230 = tpu.memref_squeeze %229 : memref<1x32xf32, #tpu.memory_space<any>> -> memref<32xf32, #tpu.memory_space<any>>
    %c0_i32_138 = arith.constant 0 : i32
    %231 = tpu.memref_slice %arg4[%c14_i32_135, %c0_i32_138] : memref<16x32xf32, #tpu.memory_space<vmem>> -> memref<1x32xf32, #tpu.memory_space<vmem>>
    %232 = tpu.memref_squeeze %231 : memref<1x32xf32, #tpu.memory_space<vmem>> -> memref<32xf32, #tpu.memory_space<vmem>>
    %233 = tpu.memref_slice %arg5[%c14_i32_136] : memref<16x!tpu.dma_semaphore, #tpu.memory_space<semaphore_mem>> -> memref<1x!tpu.dma_semaphore, #tpu.memory_space<semaphore_mem>>
    %234 = tpu.memref_squeeze %233 : memref<1x!tpu.dma_semaphore, #tpu.memory_space<semaphore_mem>> -> memref<!tpu.dma_semaphore, #tpu.memory_space<semaphore_mem>>
    tpu.wait_dma2 semaphore(%234 : memref<!tpu.dma_semaphore, #tpu.memory_space<semaphore_mem>>) src(%230 : memref<32xf32, #tpu.memory_space<any>>) dst(%232 : memref<32xf32, #tpu.memory_space<vmem>>)
    %c0_i32_139 = arith.constant 0 : i32
    %c15_i32_140 = arith.constant 15 : i32
    %c15_i32_141 = arith.constant 15 : i32
    %c0_i32_142 = arith.constant 0 : i32
    %235 = tpu.memref_slice %arg2[%c0_i32_139, %c0_i32_142] : memref<128x32xf32, #tpu.memory_space<any>> -> memref<1x32xf32, #tpu.memory_space<any>>
    %236 = tpu.memref_squeeze %235 : memref<1x32xf32, #tpu.memory_space<any>> -> memref<32xf32, #tpu.memory_space<any>>
    %c0_i32_143 = arith.constant 0 : i32
    %237 = tpu.memref_slice %arg4[%c15_i32_140, %c0_i32_143] : memref<16x32xf32, #tpu.memory_space<vmem>> -> memref<1x32xf32, #tpu.memory_space<vmem>>
    %238 = tpu.memref_squeeze %237 : memref<1x32xf32, #tpu.memory_space<vmem>> -> memref<32xf32, #tpu.memory_space<vmem>>
    %239 = tpu.memref_slice %arg5[%c15_i32_141] : memref<16x!tpu.dma_semaphore, #tpu.memory_space<semaphore_mem>> -> memref<1x!tpu.dma_semaphore, #tpu.memory_space<semaphore_mem>>
    %240 = tpu.memref_squeeze %239 : memref<1x!tpu.dma_semaphore, #tpu.memory_space<semaphore_mem>> -> memref<!tpu.dma_semaphore, #tpu.memory_space<semaphore_mem>>
    tpu.wait_dma2 semaphore(%240 : memref<!tpu.dma_semaphore, #tpu.memory_space<semaphore_mem>>) src(%236 : memref<32xf32, #tpu.memory_space<any>>) dst(%238 : memref<32xf32, #tpu.memory_space<vmem>>)
    %c0 = arith.constant 0 : index
    %c0_144 = arith.constant 0 : index
    %241 = vector.load %arg4[%c0, %c0_144] : memref<16x32xf32, #tpu.memory_space<vmem>>, vector<16x32xf32>
    %cst = arith.constant 5.65685415 : f32
    %242 = vector.broadcast %cst : f32 to vector<16x32xf32>
    %243 = arith.mulf %241, %242 : vector<16x32xf32>
    %c0_145 = arith.constant 0 : index
    %c0_146 = arith.constant 0 : index
    %244 = vector.load %arg3[%c0_145, %c0_146] : memref<16x32xf32, #tpu.memory_space<vmem>>, vector<16x32xf32>
    tpu.vector_store %arg3[%c0_145, %c0_146], %243 {strides = array<i32>} : memref<16x32xf32, #tpu.memory_space<vmem>>, vector<16x32xf32>,
    return
  }
  func.func @transform_1(%arg0: i32, %arg1: memref<16xi32, #tpu.memory_space<smem>>) -> (i32, i32) {
    %c0_i32 = arith.constant 0 : i32
    %c0_i32_0 = arith.constant 0 : i32
    return %arg0, %c0_i32 : i32, i32
  }
}

</mosaic_0001>

<bundles_post_ra>
// kernel: tpu_custom_call.1
= control target key start
LH: loop header
LB: loop body
LE: loop exit
PB: predicated region body
PF: predicated region fallthrough
CT: control target
= control target key end

     0   :  { %s993_s12 = smov [#allocation5]   ;;  %s1066_s0 = inlined_call_operand.vmem [shape: s32[16], index: 0, kind: input, shape index: {}]   ;;  %s1067_s1 = inlined_call_operand.vmem [shape: f32[128,32], index: 1, kind: input, shape index: {}]   ;;  %s1068_s2 = inlined_call_operand.hbm [shape: f32[16,32], index: 2, kind: output, shape index: {}]  }
   0x1   :  { %s8_s11 = sshll.u32 %s1066_s0, 4  ;;  %s9_s11 = int_to_ptr.vmem [resolvable:$true] %s8_s11 }
   0x2   :  { %11 = dma.vmem_to_smem %s9_s11, 16, %s993_s12, [#allocation4] }
   0x3   :  { %957 = dma.done.wait [#allocation4], 16 }
   0x4   :  { %958 = vsyncadd [#allocation4], 4294967280 }
   0x5   :  { %14 = sfence }
   0x6   :  { %15 = vsyncpa [#allocation7], 0  ;;  %s17_s13 = sld [smem:[#allocation5]] }
   0xc   :  { %s18_s16 = scalar_lea.vmem %s1067_s1, %s17_s13 }
   0xd   :  { %v33_v0 = vld [vmem:[%s18_s16] sm:$0x1] }
   0xe   :  { %34 = vst [vmem:[#allocation2] sm:$0x1] %v33_v0 }
   0xf   :  { %52 = vsyncadd [#allocation3], 16  ;;  %s886_s17 = sld [smem:[#allocation5 + $0x1]] }
  0x15   :  { %s55_s0 = scalar_lea.vmem %s1067_s1, %s886_s17 }
  0x16   :  { %v72_v1 = vld [vmem:[%s55_s0] sm:$0x1] }
  0x17   :  { %73 = vst [vmem:[#allocation2 + $0x1] sm:$0x1] %v72_v1 }
  0x18   :  { %91 = vsyncadd [#allocation3 + $0x1], 16  ;;  %s887_s20 = sld [smem:[#allocation5 + $0x2]] }
  0x1e   :  { %s94_s23 = scalar_lea.vmem %s1067_s1, %s887_s20 }
  0x1f   :  { %v111_v2 = vld [vmem:[%s94_s23] sm:$0x1] }
  0x20   :  { %112 = vst [vmem:[#allocation2 + $0x2] sm:$0x1] %v111_v2 }
  0x21   :  { %130 = vsyncadd [#allocation3 + $0x2], 16  ;;  %s888_s24 = sld [smem:[#allocation5 + $0x3]] }
  0x27   :  { %s133_s27 = scalar_lea.vmem %s1067_s1, %s888_s24 }
  0x28   :  { %v150_v3 = vld [vmem:[%s133_s27] sm:$0x1] }
  0x29   :  { %151 = vst [vmem:[#allocation2 + $0x3] sm:$0x1] %v150_v3 }
  0x2a   :  { %169 = vsyncadd [#allocation3 + $0x3], 16  ;;  %s889_s28 = sld [smem:[#allocation5 + $0x4]] }
  0x30   :  { %s172_s3 = scalar_lea.vmem %s1067_s1, %s889_s28 }
  0x31   :  { %v189_v4 = vld [vmem:[%s172_s3] sm:$0x1] }
  0x32   :  { %190 = vst [vmem:[#allocation2 + $0x4] sm:$0x1] %v189_v4 }
  0x33   :  { %208 = vsyncadd [#allocation3 + $0x4], 16  ;;  %s890_s4 = sld [smem:[#allocation5 + $0x5]] }
  0x39   :  { %s211_s7 = scalar_lea.vmem %s1067_s1, %s890_s4 }
  0x3a   :  { %v228_v5 = vld [vmem:[%s211_s7] sm:$0x1] }
  0x3b   :  { %229 = vst [vmem:[#allocation2 + $0x5] sm:$0x1] %v228_v5 }
  0x3c   :  { %247 = vsyncadd [#allocation3 + $0x5], 16  ;;  %s891_s8 = sld [smem:[#allocation5 + $0x6]] }
  0x42   :  { %s250_s11 = scalar_lea.vmem %s1067_s1, %s891_s8 }
  0x43   :  { %v267_v6 = vld [vmem:[%s250_s11] sm:$0x1] }
  0x44   :  { %268 = vst [vmem:[#allocation2 + $0x6] sm:$0x1] %v267_v6 }
  0x45   :  { %286 = vsyncadd [#allocation3 + $0x6], 16  ;;  %s892_s12 = sld [smem:[#allocation5 + $0x7]] }
  0x4b   :  { %s289_s15 = scalar_lea.vmem %s1067_s1, %s892_s12 }
  0x4c   :  { %v306_v7 = vld [vmem:[%s289_s15] sm:$0x1] }
  0x4d   :  { %307 = vst [vmem:[#allocation2 + $0x7] sm:$0x1] %v306_v7 }
  0x4e   :  { %325 = vsyncadd [#allocation3 + $0x7], 16  ;;  %s893_s16 = sld [smem:[#allocation5 + $0x8]] }
  0x54   :  { %s328_s19 = scalar_lea.vmem %s1067_s1, %s893_s16 }
  0x55   :  { %v345_v8 = vld [vmem:[%s328_s19] sm:$0x1] }
  0x56   :  { %346 = vst [vmem:[#allocation2 + $0x8] sm:$0x1] %v345_v8 }
  0x57   :  { %364 = vsyncadd [#allocation3 + $0x8], 16  ;;  %s894_s0 = sld [smem:[#allocation5 + $0x9]] }
  0x5d   :  { %s367_s22 = scalar_lea.vmem %s1067_s1, %s894_s0 }
  0x5e   :  { %v384_v9 = vld [vmem:[%s367_s22] sm:$0x1] }
  0x5f   :  { %385 = vst [vmem:[#allocation2 + $0x9] sm:$0x1] %v384_v9 }
  0x60   :  { %403 = vsyncadd [#allocation3 + $0x9], 16  ;;  %s895_s23 = sld [smem:[#allocation5 + $0xa]] }
  0x66   :  { %s406_s26 = scalar_lea.vmem %s1067_s1, %s895_s23 }
  0x67   :  { %v423_v10 = vld [vmem:[%s406_s26] sm:$0x1] }
  0x68   :  { %424 = vst [vmem:[#allocation2 + $0xa] sm:$0x1] %v423_v10 }
  0x69   :  { %442 = vsyncadd [#allocation3 + $0xa], 16  ;;  %s896_s27 = sld [smem:[#allocation5 + $0xb]] }
  0x6f   :  { %s445_s30 = scalar_lea.vmem %s1067_s1, %s896_s27 }
  0x70   :  { %v462_v11 = vld [vmem:[%s445_s30] sm:$0x1] }
  0x71   :  { %463 = vst [vmem:[#allocation2 + $0xb] sm:$0x1] %v462_v11 }
  0x72   :  { %481 = vsyncadd [#allocation3 + $0xb], 16  ;;  %s897_s3 = sld [smem:[#allocation5 + $0xc]] }
  0x78   :  { %s484_s6 = scalar_lea.vmem %s1067_s1, %s897_s3 }
  0x79   :  { %v501_v12 = vld [vmem:[%s484_s6] sm:$0x1] }
  0x7a   :  { %502 = vst [vmem:[#allocation2 + $0xc] sm:$0x1] %v501_v12 }
  0x7b   :  { %520 = vsyncadd [#allocation3 + $0xc], 16  ;;  %s898_s7 = sld [smem:[#allocation5 + $0xd]] }
  0x81   :  { %s523_s10 = scalar_lea.vmem %s1067_s1, %s898_s7 }
  0x82   :  { %v540_v13 = vld [vmem:[%s523_s10] sm:$0x1] }
  0x83   :  { %541 = vst [vmem:[#allocation2 + $0xd] sm:$0x1] %v540_v13 }
  0x84   :  { %559 = vsyncadd [#allocation3 + $0xd], 16  ;;  %s899_s11 = sld [smem:[#allocation5 + $0xe]] }
  0x8a   :  { %s562_s14 = scalar_lea.vmem %s1067_s1, %s899_s11 }
  0x8b   :  { %v579_v14 = vld [vmem:[%s562_s14] sm:$0x1] }
  0x8c   :  { %580 = vst [vmem:[#allocation2 + $0xe] sm:$0x1] %v579_v14 }
  0x8d   :  { %598 = vsyncadd [#allocation3 + $0xe], 16  ;;  %s900_s15 = sld [smem:[#allocation5 + $0xf]] }
  0x93   :  { %s601_s18 = scalar_lea.vmem %s1067_s1, %s900_s15 }
  0x94   :  { %v618_v15 = vld [vmem:[%s601_s18] sm:$0x1] }
  0x95   :  { %619 = vst [vmem:[#allocation2 + $0xf] sm:$0x1] %v618_v15 }
  0x96   :  { %637 = vsyncadd [#allocation3 + $0xf], 16 }
  0x97   :  { %959 = dma.done.wait [#allocation3], 16 }
  0x98   :  { %960 = vsyncadd [#allocation3], 4294967280 }
  0x99   :  { %961 = dma.done.wait [#allocation3 + $0x1], 16 }
  0x9a   :  { %962 = vsyncadd [#allocation3 + $0x1], 4294967280 }
  0x9b   :  { %963 = dma.done.wait [#allocation3 + $0x2], 16 }
  0x9c   :  { %964 = vsyncadd [#allocation3 + $0x2], 4294967280 }
  0x9d   :  { %965 = dma.done.wait [#allocation3 + $0x3], 16 }
  0x9e   :  { %966 = vsyncadd [#allocation3 + $0x3], 4294967280 }
  0x9f   :  { %967 = dma.done.wait [#allocation3 + $0x4], 16 }
  0xa0   :  { %968 = vsyncadd [#allocation3 + $0x4], 4294967280 }
  0xa1   :  { %969 = dma.done.wait [#allocation3 + $0x5], 16 }
  0xa2   :  { %970 = vsyncadd [#allocation3 + $0x5], 4294967280 }
  0xa3   :  { %971 = dma.done.wait [#allocation3 + $0x6], 16 }
  0xa4   :  { %972 = vsyncadd [#allocation3 + $0x6], 4294967280 }
  0xa5   :  { %973 = dma.done.wait [#allocation3 + $0x7], 16 }
  0xa6   :  { %974 = vsyncadd [#allocation3 + $0x7], 4294967280 }
  0xa7   :  { %975 = dma.done.wait [#allocation3 + $0x8], 16 }
  0xa8   :  { %976 = vsyncadd [#allocation3 + $0x8], 4294967280 }
  0xa9   :  { %977 = dma.done.wait [#allocation3 + $0x9], 16 }
  0xaa   :  { %978 = vsyncadd [#allocation3 + $0x9], 4294967280 }
  0xab   :  { %979 = dma.done.wait [#allocation3 + $0xa], 16 }
  0xac   :  { %980 = vsyncadd [#allocation3 + $0xa], 4294967280 }
  0xad   :  { %981 = dma.done.wait [#allocation3 + $0xb], 16 }
  0xae   :  { %982 = vsyncadd [#allocation3 + $0xb], 4294967280 }
  0xaf   :  { %983 = dma.done.wait [#allocation3 + $0xc], 16 }
  0xb0   :  { %984 = vsyncadd [#allocation3 + $0xc], 4294967280 }
  0xb1   :  { %985 = dma.done.wait [#allocation3 + $0xd], 16 }
  0xb2   :  { %986 = vsyncadd [#allocation3 + $0xd], 4294967280 }
  0xb3   :  { %987 = dma.done.wait [#allocation3 + $0xe], 16 }
  0xb4   :  { %988 = vsyncadd [#allocation3 + $0xe], 4294967280 }
  0xb5   :  { %989 = dma.done.wait [#allocation3 + $0xf], 16 }
  0xb6   :  { %990 = vsyncadd [#allocation3 + $0xf], 4294967280  ;;  %s994_s1 = smov [#allocation6]   ;;  %s683_s21 = sshll.u32 %s1068_s2, 4  ;;  %v670_v16 = vld [vmem:[#allocation2] sm:$0xff]  ;;  %vm674_vm0 = vcmask 261120   ;;  %s684_s21 = int_to_ptr.hbm [resolvable:$true] %s683_s21 }
  0xb7   :  { %s681_s19 = sshll.u32 %s994_s1, 4  ;;  %v671_v17 = vld [vmem:[#allocation2 + $0x8] sm:$0xff]  ;;  %v672_v18 = vmul.f32 5.656854, %v670_v16  ;;  %s995_s22 = smov 128   ;;  %s682_s19 = int_to_ptr.vmem [resolvable:$true] %s681_s19 }
  0xb8   :  { %v673_v19 = vmul.f32 5.656854, %v671_v17  ;;  %s996_s23 = smov 8  }
  0xb9   :  { %675 = vst.msk [vmem:[#allocation6] sm:$0xff] %vm674_vm0, %v672_v18 }
  0xba   :  { %676 = vst.msk [vmem:[#allocation6 + $0x8] sm:$0xff] %vm674_vm0, %v673_v19 }
  0xbb   :  { %689 = dma.vmem_to_hbm [thread:$0]  %s682_s19, 256, %s684_s21, [#allocation7], %s995_s22, %s995_s22, %s996_s23  }
  0xbc   :  { %991 = dma.done.wait [#allocation7], 256  }
  0xbd   :  { %992 = vsyncadd [#allocation7], 4294967040 }
  0xbe   :  { %694 = vsyncpa [#allocation7], 1 }
  0xbf   :  { %695 = vsyncmov [#allocation3] }
  0xc2   :  { %s696_s24 = vpop.sfrf %695 }
  0xc3   :  { %p901_p0 = scmp.ne.s32.totalorder %s696_s24, 0 }
  0xc5   :  { %700 = shalt.err (%p901_p0)  }
  0xc6   :  { %702 = vsyncmov [#allocation3 + $0x1] }
  0xc9   :  { %s703_s2 = vpop.sfrf %702 }
  0xca   :  { %p902_p1 = scmp.ne.s32.totalorder %s703_s2, 0 }
  0xcc   :  { %707 = shalt.err (%p902_p1)  }
  0xcd   :  { %709 = vsyncmov [#allocation3 + $0x2] }
  0xd0   :  { %s710_s25 = vpop.sfrf %709 }
  0xd1   :  { %p903_p2 = scmp.ne.s32.totalorder %s710_s25, 0 }
  0xd3   :  { %714 = shalt.err (%p903_p2)  }
  0xd4   :  { %716 = vsyncmov [#allocation3 + $0x3] }
  0xd7   :  { %s717_s26 = vpop.sfrf %716 }
  0xd8   :  { %p904_p3 = scmp.ne.s32.totalorder %s717_s26, 0 }
  0xda   :  { %721 = shalt.err (%p904_p3)  }
  0xdb   :  { %723 = vsyncmov [#allocation3 + $0x4] }
  0xde   :  { %s724_s27 = vpop.sfrf %723 }
  0xdf   :  { %p905_p4 = scmp.ne.s32.totalorder %s724_s27, 0 }
  0xe1   :  { %728 = shalt.err (%p905_p4)  }
  0xe2   :  { %730 = vsyncmov [#allocation3 + $0x5] }
  0xe5   :  { %s731_s28 = vpop.sfrf %730 }
  0xe6   :  { %p906_p5 = scmp.ne.s32.totalorder %s731_s28, 0 }
  0xe8   :  { %735 = shalt.err (%p906_p5)  }
  0xe9   :  { %737 = vsyncmov [#allocation3 + $0x6] }
  0xec   :  { %s738_s29 = vpop.sfrf %737 }
  0xed   :  { %p907_p6 = scmp.ne.s32.totalorder %s738_s29, 0 }
  0xef   :  { %742 = shalt.err (%p907_p6)  }
  0xf0   :  { %744 = vsyncmov [#allocation3 + $0x7] }
  0xf3   :  { %s745_s30 = vpop.sfrf %744 }
  0xf4   :  { %p908_p7 = scmp.ne.s32.totalorder %s745_s30, 0 }
  0xf6   :  { %749 = shalt.err (%p908_p7)  }
  0xf7   :  { %751 = vsyncmov [#allocation3 + $0x8] }
  0xfa   :  { %s752_s3 = vpop.sfrf %751 }
  0xfb   :  { %p909_p8 = scmp.ne.s32.totalorder %s752_s3, 0 }
  0xfd   :  { %756 = shalt.err (%p909_p8)  }
  0xfe   :  { %758 = vsyncmov [#allocation3 + $0x9] }
 0x101   :  { %s759_s4 = vpop.sfrf %758 }
 0x102   :  { %p910_p9 = scmp.ne.s32.totalorder %s759_s4, 0 }
 0x104   :  { %763 = shalt.err (%p910_p9)  }
 0x105   :  { %765 = vsyncmov [#allocation3 + $0xa] }
 0x108   :  { %s766_s5 = vpop.sfrf %765 }
 0x109   :  { %p911_p10 = scmp.ne.s32.totalorder %s766_s5, 0 }
 0x10b   :  { %770 = shalt.err (%p911_p10)  }
 0x10c   :  { %772 = vsyncmov [#allocation3 + $0xb] }
 0x10f   :  { %s773_s6 = vpop.sfrf %772 }
 0x110   :  { %p912_p11 = scmp.ne.s32.totalorder %s773_s6, 0 }
 0x112   :  { %777 = shalt.err (%p912_p11)  }
 0x113   :  { %779 = vsyncmov [#allocation3 + $0xc] }
 0x116   :  { %s780_s7 = vpop.sfrf %779 }
 0x117   :  { %p913_p12 = scmp.ne.s32.totalorder %s780_s7, 0 }
 0x119   :  { %784 = shalt.err (%p913_p12)  }
 0x11a   :  { %786 = vsyncmov [#allocation3 + $0xd] }
 0x11d   :  { %s787_s8 = vpop.sfrf %786 }
 0x11e   :  { %p914_p13 = scmp.ne.s32.totalorder %s787_s8, 0 }
 0x120   :  { %791 = shalt.err (%p914_p13)  }
 0x121   :  { %793 = vsyncmov [#allocation3 + $0xe] }
 0x124   :  { %s794_s9 = vpop.sfrf %793 }
 0x125   :  { %p915_p0 = scmp.ne.s32.totalorder %s794_s9, 0 }
 0x127   :  { %798 = shalt.err (%p915_p0)  }
 0x128   :  { %800 = vsyncmov [#allocation3 + $0xf] }
 0x12b   :  { %s801_s10 = vpop.sfrf %800 }
 0x12c   :  { %p916_p1 = scmp.ne.s32.totalorder %s801_s10, 0 }
 0x12e   :  { %805 = shalt.err (%p916_p1)  }

</bundles_post_ra>
